<compile_context>
chip_gen: v6e
topology: v6e:2x2x1
jax: 0.10.0
libtpu: 0.0.40
codegen_flags: <defaults>
</compile_context>

<pallas_src>
import functools

import jax
import jax.numpy as jnp
from jax.experimental import pallas as pl
from jax.experimental.pallas import tpu as pltpu

LANE = 128           # vreg lane width
SUBLANE = 8          # vreg sublane count (f32)
MAX_TILE_ROWS = 2048 # (2048, 128) f32 tile = 1 MiB per buffer
NUM_SPLITS = 2       # leading 'parallel' grid axis (v7x has 2 TensorCores)


def _lsgan_kernel(x_ref, out_ref, acc_ref, *, target, inv_n, rows,
                  tile_rows, tiles_per_split, num_tiles):
    """Accumulate sum((x - target)^2) into a VMEM vector accumulator.

    x_ref   : VMEM (tile_rows, LANE)  tile of flattened logits (native dtype)
    out_ref : VMEM (1, 1, LANE)       per-split partial (already scaled by 1/n)
    acc_ref : VMEM (tile_rows, LANE)  f32 running elementwise accumulator
    """
    p = pl.program_id(0)   # parallel split
    i = pl.program_id(1)   # reduction step within the split

    @pl.when(i == 0)
    def _():
        acc_ref[...] = jnp.zeros_like(acc_ref)

    # Logical tile id; the index_map clamps the DMA in-bounds, so duplicated /
    # out-of-range tiles and the ragged last tile are neutralized by masking
    # (mask applied BEFORE squaring so garbage lanes cannot produce NaN/Inf).
    t = p * tiles_per_split + i
    tc = jnp.minimum(t, num_tiles - 1)
    valid_rows = jnp.where(t < num_tiles, rows - tc * tile_rows, 0)
    row_idx = jax.lax.broadcasted_iota(jnp.int32, (tile_rows, LANE), 0)
    mask = row_idx < valid_rows

    diff = jnp.where(mask, x_ref[...].astype(jnp.float32) - target, 0.0)
    acc_ref[...] += diff * diff          # one vmul + vadd per vreg, hidden under DMA

    @pl.when(i == pl.num_programs(1) - 1)
    def _():
        partial = jnp.sum(acc_ref[...], axis=0, keepdims=True) * inv_n  # (1, LANE)
        out_ref[...] = partial[None]                                    # (1, 1, LANE)


def lsgan_loss(pred_logits, real=True):
    """LSGAN (least-squares GAN) loss: MSE of logits vs constant target."""
    target_val = 1.0 if real else 0.0
    x = pred_logits.reshape(-1)          # keep native dtype; cast in-kernel
    n = x.shape[0]

    # Rare path: if n isn't a multiple of 8*128, pad a tiny tail with the
    # target value (contributes exactly zero) so the (rows, 128) reshape works.
    pad = (-n) % (SUBLANE * LANE)
    if pad:
        x = jnp.concatenate([x, jnp.full((pad,), target_val, x.dtype)])
    rows = x.shape[0] // LANE
    x2 = x.reshape(rows, LANE)

    tile_rows = min(MAX_TILE_ROWS, rows)          # rows is a multiple of 8
    num_tiles = pl.cdiv(rows, tile_rows)
    num_splits = min(NUM_SPLITS, num_tiles)
    tiles_per_split = pl.cdiv(num_tiles, num_splits)

    kernel = functools.partial(
        _lsgan_kernel,
        target=float(target_val),
        inv_n=1.0 / float(n),
        rows=rows,
        tile_rows=tile_rows,
        tiles_per_split=tiles_per_split,
        num_tiles=num_tiles)

    partials = pl.pallas_call(
        kernel,
        out_shape=jax.ShapeDtypeStruct((num_splits, 1, LANE), jnp.float32),
        grid=(num_splits, tiles_per_split),
        in_specs=[pl.BlockSpec(
            (tile_rows, LANE),
            lambda p, i: (jnp.minimum(p * tiles_per_split + i, num_tiles - 1), 0))],
        out_specs=pl.BlockSpec((1, 1, LANE), lambda p, i: (p, 0, 0)),
        scratch_shapes=[pltpu.VMEM((tile_rows, LANE), jnp.float32)],
        compiler_params=pltpu.CompilerParams(
            dimension_semantics=("parallel", "arbitrary")),
    )(x2)

    # Tiny finalize: sum 2*128 partial lanes (already scaled by 1/n).
    return jnp.sum(partials)


if __name__ == "__main__":
    key = jax.random.PRNGKey(0)
    # Discriminator-style logits, NCHW: batch=2, channels=4, spatial=16x16.
    pred_logits = jax.random.normal(key, (2, 4, 16, 16), dtype=jnp.float32)

    loss_real = jax.block_until_ready(lsgan_loss(pred_logits, real=True))
    loss_fake = jax.block_until_ready(lsgan_loss(pred_logits, real=False))

    # Reference check against plain JAX (== PyTorch nn.MSELoss semantics).
    ref_real = jnp.mean((pred_logits - 1.0) ** 2)
    ref_fake = jnp.mean((pred_logits - 0.0) ** 2)
    assert jnp.allclose(loss_real, ref_real, rtol=1e-5, atol=1e-6)
    assert jnp.allclose(loss_fake, ref_fake, rtol=1e-5, atol=1e-6)

    print("KERNEL_OK")
</pallas_src>

<mosaic_0001>
module attributes {stable_mosaic.version = 11 : i64} {
  func.func @_lsgan_kernel(%arg0: i32, %arg1: i32, %arg2: memref<16x128xf32, #tpu.memory_space<vmem>>, %arg3: memref<1x1x128xf32, #tpu.memory_space<vmem>>, %arg4: memref<16x128xf32, #tpu.memory_space<vmem>>) attributes {dimension_semantics = [#tpu.dimension_semantics<parallel>, #tpu.dimension_semantics<arbitrary>], iteration_bounds = array<i64: 1, 1>, scalar_prefetch = 0 : i64, scratch_operands = 1 : i64, tpu.core_type = #tpu.core_type<tc>, window_params = [{transform_indices = @transform_0, window_bounds = array<i64: 16, 128>}, {transform_indices = @transform_1, window_bounds = array<i64: 1, 1, 128>}]} {
    %c0_i32 = arith.constant 0 : i32
    %0 = arith.cmpi eq, %arg1, %c0_i32 : i32
    %1 = arith.extui %0 : i1 to i32
    %c0_i32_0 = arith.constant 0 : i32
    %2 = arith.cmpi ne, %1, %c0_i32_0 : i32
    scf.if %2 {
      %cst_13 = arith.constant 0.000000e+00 : f32
      %25 = vector.broadcast %cst_13 : f32 to vector<16x128xf32>
      %c0_14 = arith.constant 0 : index
      %c0_15 = arith.constant 0 : index
      %26 = vector.load %arg4[%c0_14, %c0_15] : memref<16x128xf32, #tpu.memory_space<vmem>>, vector<16x128xf32>
      tpu.vector_store %arg4[%c0_14, %c0_15], %25 {strides = array<i32>} : memref<16x128xf32, #tpu.memory_space<vmem>>, vector<16x128xf32>,
    } else {
    }
    %c1_i32 = arith.constant 1 : i32
    %3 = arith.muli %arg0, %c1_i32 : i32
    %4 = arith.addi %3, %arg1 : i32
    %c0_i32_1 = arith.constant 0 : i32
    %5 = arith.minsi %4, %c0_i32_1 : i32
    %c1_i32_2 = arith.constant 1 : i32
    %6 = arith.cmpi slt, %4, %c1_i32_2 : i32
    %c16_i32 = arith.constant 16 : i32
    %7 = arith.muli %5, %c16_i32 : i32
    %c16_i32_3 = arith.constant 16 : i32
    %8 = arith.subi %c16_i32_3, %7 : i32
    %c0_i32_4 = arith.constant 0 : i32
    %9 = arith.select %6, %8, %c0_i32_4 : i32
    %10 = tpu.iota {dimensions = array<i32: 0>} : vector<16x128xi32>
    %11 = vector.broadcast %9 : i32 to vector<16x128xi32>
    %12 = arith.cmpi slt, %10, %11 : vector<16x128xi32>
    %c0 = arith.constant 0 : index
    %c0_5 = arith.constant 0 : index
    %13 = vector.load %arg2[%c0, %c0_5] : memref<16x128xf32, #tpu.memory_space<vmem>>, vector<16x128xf32>
    %cst = arith.constant 1.000000e+00 : f32
    %14 = vector.broadcast %cst : f32 to vector<16x128xf32>
    %15 = arith.subf %13, %14 : vector<16x128xf32>
    %cst_6 = arith.constant 0.000000e+00 : f32
    %16 = vector.broadcast %cst_6 : f32 to vector<16x128xf32>
    %17 = arith.select %12, %15, %16 : vector<16x128xi1>, vector<16x128xf32>
    %c0_7 = arith.constant 0 : index
    %c0_8 = arith.constant 0 : index
    %18 = vector.load %arg4[%c0_7, %c0_8] : memref<16x128xf32, #tpu.memory_space<vmem>>, vector<16x128xf32>
    %19 = arith.mulf %17, %17 : vector<16x128xf32>
    %20 = arith.addf %18, %19 : vector<16x128xf32>
    %c0_9 = arith.constant 0 : index
    %c0_10 = arith.constant 0 : index
    %21 = vector.load %arg4[%c0_9, %c0_10] : memref<16x128xf32, #tpu.memory_space<vmem>>, vector<16x128xf32>
    tpu.vector_store %arg4[%c0_9, %c0_10], %20 {strides = array<i32>} : memref<16x128xf32, #tpu.memory_space<vmem>>, vector<16x128xf32>,
    %c0_i32_11 = arith.constant 0 : i32
    %22 = arith.cmpi eq, %arg1, %c0_i32_11 : i32
    %23 = arith.extui %22 : i1 to i32
    %c0_i32_12 = arith.constant 0 : i32
    %24 = arith.cmpi ne, %23, %c0_i32_12 : i32
    scf.if %24 {
      %c0_13 = arith.constant 0 : index
      %c0_14 = arith.constant 0 : index
      %25 = vector.load %arg4[%c0_13, %c0_14] : memref<16x128xf32, #tpu.memory_space<vmem>>, vector<16x128xf32>
      %cst_15 = arith.constant dense<0.000000e+00> : vector<128xf32>
      %26 = vector.multi_reduction <add>, %25, %cst_15 [0] : vector<16x128xf32> to vector<128xf32>
      %27 = vector.shape_cast %26 : vector<128xf32> to vector<1x128xf32>
      %cst_16 = arith.constant 4.8828125E-4 : f32
      %28 = vector.broadcast %cst_16 : f32 to vector<1x128xf32>
      %29 = arith.mulf %27, %28 : vector<1x128xf32>
      %30 = vector.shape_cast %29 : vector<1x128xf32> to vector<1x1x128xf32>
      %c0_17 = arith.constant 0 : index
      %c0_18 = arith.constant 0 : index
      %c0_19 = arith.constant 0 : index
      %31 = vector.load %arg3[%c0_17, %c0_18, %c0_19] : memref<1x1x128xf32, #tpu.memory_space<vmem>>, vector<1x1x128xf32>
      tpu.vector_store %arg3[%c0_17, %c0_18, %c0_19], %30 {strides = array<i32>} : memref<1x1x128xf32, #tpu.memory_space<vmem>>, vector<1x1x128xf32>,
    } else {
    }
    return
  }
  func.func @transform_0(%arg0: i32, %arg1: i32) -> (i32, i32) {
    %c1_i32 = arith.constant 1 : i32
    %0 = arith.muli %arg0, %c1_i32 : i32
    %1 = arith.addi %0, %arg1 : i32
    %c0_i32 = arith.constant 0 : i32
    %2 = arith.minsi %1, %c0_i32 : i32
    %c0_i32_0 = arith.constant 0 : i32
    %c0_i32_1 = arith.constant 0 : i32
    return %2, %c0_i32_0 : i32, i32
  }
  func.func @transform_1(%arg0: i32, %arg1: i32) -> (i32, i32, i32) {
    %c0_i32 = arith.constant 0 : i32
    %c0_i32_0 = arith.constant 0 : i32
    %c0_i32_1 = arith.constant 0 : i32
    return %arg0, %c0_i32, %c0_i32_0 : i32, i32, i32
  }
}

</mosaic_0001>

<bundles_post_ra>
// kernel: tpu_custom_call.1
= control target key start
LH: loop header
LB: loop body
LE: loop exit
PB: predicated region body
PF: predicated region fallthrough
CT: control target
= control target key end

     0   :  { %6 = vsyncpa [#allocation4], 0  ;;  %s167_s0 = inlined_call_operand.hbm [shape: f32[16,128], index: 0, kind: input, shape index: {}]   ;;  %s168_s1 = inlined_call_operand.hbm [shape: f32[1,1,128], index: 1, kind: output, shape index: {}]  }
   0x1   :  { %7 = vsyncpa [#allocation5], 0  ;;  %s147_s6 = smov [#allocation3]  }
   0x2   :  { %s19_s7 = sshll.u32 %s147_s6, 4  ;;  %s20_s7 = int_to_ptr.vmem [resolvable:$true] %s19_s7 }
   0x3   :  { %s111_s8 = scalar_lea.vmem %s20_s7, 256  ;;  %p116_p1 = scmp.lt.s32.totalorder %s20_s7, %s20_s7 }
   0x4   :  { %p112_p0 = scmp.ne.s32.totalorder %s20_s7, %s111_s8  ;;  %p117_p2 = scmp.lt.s32.totalorder %s111_s8, %s111_s8 }
   0x6   :  { %p118_p3 = por %p117_p2, %p116_p1 }
   0x8   :  { %p119_p4 = pnand %p118_p3, %p112_p0 }
   0xa   :  { %122 = shalt.err (!%p119_p4)
}
   0xb   :  { %s148_s9 = smov 128   ;;  %s149_s10 = smov 8  }
   0xc   :  { %25 = dma.hbm_to_vmem [thread:$0]  %s167_s0, 256, %s20_s7, [#allocation4], %s148_s9, %s148_s9, %s149_s10  }
   0xd   :  { %143 = dma.done.wait [#allocation4], 256  }
   0xe   :  { %144 = vsyncadd [#allocation4], 4294967040  ;;  %v52_v0 = vld [vmem:[#allocation3] sm:$0xff]  ;;  %v53_v1 = vld [vmem:[#allocation3 + $0x8] sm:$0xff]  ;;  %s150_s13 = smov [#allocation6]  }
   0xf   :  { %v97_v2 = vadd.f32 -1.0, %v52_v0  ;;  %v98_v3 = vadd.f32 -1.0, %v53_v1  ;;  %s86_s14 = sshll.u32 %s150_s13, 4  ;;  %s87_s14 = int_to_ptr.vmem [resolvable:$true] %s86_s14 }
  0x10   :  { %s123_s0 = scalar_lea.vmem %s87_s14, 16  ;;  %s127_s15 = scalar_lea.vmem %s87_s14, 32 }
  0x11   :  { %v60_v4 = vmul.f32 %v97_v2, %v97_v2  ;;  %v61_v5 = vmul.f32 %v98_v3, %v98_v3  ;;  %p124_p5 = scmp.ne.s32.totalorder %s87_s14, %s123_s0  ;;  %p128_p6 = scmp.lt.s32.totalorder %s87_s14, %s87_s14 }
  0x12   :  { %p129_p7 = scmp.lt.s32.totalorder %s127_s15, %s123_s0 }
  0x13   :  { %v71_v6 = vadd.f32 %v61_v5, %v60_v4 }
  0x14   :  { %p130_p8 = por %p129_p7, %p128_p6 }
  0x15   :  { %v72_v7 = vrot.slane %v71_v6, 4 }
  0x16   :  { %p131_p9 = pnand %p130_p8, %p124_p5 }
  0x17   :  { %v73_v8 = vadd.f32 %v72_v7, %v71_v6 }
  0x19   :  { %v74_v9 = vrot.slane %v73_v8, 2 }
  0x1b   :  { %v75_v10 = vadd.f32 %v74_v9, %v73_v8 }
  0x1d   :  { %v76_v11 = vrot.slane %v75_v10, 1 }
  0x1f   :  { %v77_v12 = vadd.f32 %v76_v11, %v75_v10 }
  0x21   :  { %v78_v13 = vmul.f32 0.00048828125, %v77_v12 }
  0x23   :  { %79 = vst [vmem:[#allocation6] sm:$0x1] %v78_v13 }
  0x24   :  { %134 = shalt.err (!%p131_p9)
}
  0x25   :  { %89 = dma.vmem_to_hbm [thread:$0]  %s87_s14, 16, %s168_s1, [#allocation5]  }
  0x26   :  { %145 = dma.done.wait [#allocation5], 16  }
  0x27   :  { %146 = vsyncadd [#allocation5], 4294967280 }
  0x28   :  { %93 = vsyncpa [#allocation4], 1 }
  0x29   :  { %94 = vsyncpa [#allocation5], 1 }

</bundles_post_ra>
